<compile_context>
chip_gen: v7x
topology: tpu7x:2x2x1
jax: 0.10.0
libtpu: 0.0.40
codegen_flags: <defaults>
</compile_context>

<pallas_src>
import numpy as np
import jax
import jax.numpy as jnp
from jax.experimental import pallas as pl
from jax.experimental.pallas import tpu as pltpu


def _round_up(x, m):
    return ((x + m - 1) // m) * m


def _cdiv(a, b):
    return -(-a // b)


def _vmem_capacity_bytes():
    try:
        return int(pltpu.get_tpu_info().vmem_capacity_bytes)
    except Exception:
        return 64 << 20  # conservative fallback (v7x per-TensorCore VMEM)


# --------------------------------------------------------------------------
# Kernels
# --------------------------------------------------------------------------

def _head_kernel_resident(x_ref, w6_ref, b6_ref, w7_ref, b7_ref, o_ref):
    """Grid = (n_tiles,). w6 is fully VMEM-resident (constant index_map)."""
    # fc6 (single MXU contraction over the whole K), f32 accumulation.
    h = jnp.dot(x_ref[...], w6_ref[...], preferred_element_type=jnp.float32)
    h = jnp.maximum(h + b6_ref[...], 0.0)          # relu(fc6); dropout(eval)=id
    # fc7 + bias + relu; dropout (eval mode) = identity.
    o = jnp.dot(h.astype(w7_ref.dtype), w7_ref[...],
                preferred_element_type=jnp.float32)
    o = jnp.maximum(o + b7_ref[...], 0.0)
    o_ref[...] = o.astype(o_ref.dtype)


def _head_kernel_streamed(x_ref, w6_ref, b6_ref, w7_ref, b7_ref, o_ref, acc_ref):
    """Grid = (n_tiles, k_tiles); K (fc6 reduction) innermost, f32 accumulator.

    The fc6 bias is folded into the accumulator init at k == 0; fc7 + bias +
    relu + store run only on the last K step.
    """
    k_idx = pl.program_id(1)

    @pl.when(k_idx == 0)
    def _init():
        acc_ref[...] = jnp.broadcast_to(
            b6_ref[...].astype(jnp.float32), acc_ref.shape)

    acc_ref[...] += jnp.dot(x_ref[...], w6_ref[...],
                            preferred_element_type=jnp.float32)

    @pl.when(k_idx == pl.num_programs(1) - 1)
    def _finalize():
        h = jnp.maximum(acc_ref[...], 0.0)          # relu(fc6); dropout = id
        o = jnp.dot(h.astype(w7_ref.dtype), w7_ref[...],
                    preferred_element_type=jnp.float32)
        o = jnp.maximum(o + b7_ref[...], 0.0)       # relu(fc7); dropout = id
        o_ref[...] = o.astype(o_ref.dtype)


# --------------------------------------------------------------------------
# Wrapper
# --------------------------------------------------------------------------

def two_mlp_head(x_nchw, w6, b6, w7, b7, *, compute_dtype=jnp.bfloat16,
                 tm_max=512, tk_max=2048, w6_resident=None):
    """x_nchw: [N, ...]. w6: [K, R], b6: [R], w7: [R, R], b7: [R] with
    K = prod(x.shape[1:]) (weights already transposed to [in, out]).

    compute_dtype: streaming dtype for x / w6 / w7 (default bf16; accumulation
    stays f32). Pass None to keep the input dtype, jnp.float32 for full f32.
    w6_resident: None = auto (based on VMEM budget), True/False to force.
    """
    n = x_nchw.shape[0]
    k = int(np.prod(x_nchw.shape[1:]))
    r = int(w6.shape[1])
    out_dtype = x_nchw.dtype

    x_flat = x_nchw.reshape(n, k)                     # flatten(start_dim=1)
    if compute_dtype is not None:
        x_flat = x_flat.astype(compute_dtype)
        w6 = w6.astype(compute_dtype)
        w7 = w7.astype(compute_dtype)
    in_dtype = x_flat.dtype
    itemsize = jnp.dtype(in_dtype).itemsize
    out_itemsize = jnp.dtype(out_dtype).itemsize
    row_align = 16 if itemsize == 2 else 8            # (16,128) bf16 / (8,128) f32

    # K must be lane-aligned. Only pad (a full copy of x) when K % 128 != 0;
    # typical box-head K (e.g. 256*7*7 = 12544) and the demo K are already
    # multiples of 128, so no pad copy happens.
    k_pad = _round_up(k, 128)
    if k_pad != k:
        x_flat = jnp.pad(x_flat, ((0, 0), (0, k_pad - k)))
        w6 = jnp.pad(w6, ((0, k_pad - k), (0, 0)))
    # N is never padded: the edge N tile is partial; Pallas masks the edge
    # stores and garbage rows cannot contaminate valid rows (row-wise matmul).

    b6_2d = b6.reshape(1, r).astype(jnp.float32)
    b7_2d = b7.reshape(1, r).astype(jnp.float32)

    # Generation-aware VMEM budget (v5e/v6e 128 MiB -> ~100 MiB; v7x 64 MiB
    # per TC -> ~48 MiB), leaving headroom for compiler-internal scratch.
    vmem_cap = _vmem_capacity_bytes()
    vmem_budget = max(min(vmem_cap - (16 << 20), 100 << 20), 24 << 20)

    # Constant-index blocks (w7, b6, b7): fetched once, but double-buffered by
    # the default pipeline -> charge 2x to the budget.
    const_bytes = 2 * r * r * itemsize + 4 * r * 4

    # ---------------- resident-w6 feasibility ----------------
    w6_res_bytes = 2 * k_pad * r * itemsize            # double-buffered resident w6
    per_row_res = 2 * k_pad * itemsize + 2 * r * out_itemsize
    fit_rows_res = (vmem_budget - const_bytes - w6_res_bytes) // per_row_res
    resident_ok = fit_rows_res >= row_align
    use_resident = resident_ok if w6_resident is None else bool(w6_resident)

    if use_resident:
        tm_cap = max(row_align,
                     (max(int(fit_rows_res), row_align) // row_align) * row_align)
        tm = min(_round_up(tm_max, row_align), _round_up(n, row_align), tm_cap)
        # Megacore (v7x): keep >= 2 N tiles when N allows it — w6 is resident,
        # so the extra tile costs no additional w6 HBM traffic.
        if tm >= _round_up(n, row_align) and _round_up(n, row_align) >= 2 * row_align:
            tm = min(tm, _round_up(_cdiv(n, 2), row_align))
        n_tiles = _cdiv(n, tm)

        grid = (n_tiles,)
        in_specs = [
            pl.BlockSpec((tm, k_pad), lambda i: (i, 0)),   # x tile
            pl.BlockSpec((k_pad, r), lambda i: (0, 0)),    # w6 (VMEM-resident)
            pl.BlockSpec((1, r), lambda i: (0, 0)),        # b6 (resident)
            pl.BlockSpec((r, r), lambda i: (0, 0)),        # w7 (resident)
            pl.BlockSpec((1, r), lambda i: (0, 0)),        # b7 (resident)
        ]
        out_specs = pl.BlockSpec((tm, r), lambda i: (i, 0))
        scratch_shapes = []
        dims = ("parallel",)
        kernel = _head_kernel_resident
        w6_reads = 1
    else:
        # ---------------- K-streamed accumulation path ----------------
        # Pick tk as the largest multiple of 128 <= tk_max that divides k_pad
        # (so no partial K tiles ever mix garbage into the reduction).
        tk = min(_round_up(tk_max, 128), k_pad)
        tk = (tk // 128) * 128
        while k_pad % tk != 0:
            tk -= 128

        def _fit_tm(tk_):
            fixed = 2 * tk_ * r * itemsize + const_bytes
            per_row = 2 * tk_ * itemsize + r * 4 + 2 * r * out_itemsize
            return (vmem_budget - fixed) // per_row

        # Favor tm over tk: if even the minimum tm doesn't fit, shrink tk.
        while _fit_tm(tk) < row_align and tk > 128:
            tk = max(128, ((tk // 2) // 128) * 128)
            while k_pad % tk != 0:
                tk -= 128

        tm_cap = max(row_align,
                     (max(int(_fit_tm(tk)), row_align) // row_align) * row_align)
        tm = min(_round_up(tm_max, row_align), _round_up(n, row_align), tm_cap)
        n_tiles = _cdiv(n, tm)
        k_tiles = k_pad // tk

        grid = (n_tiles, k_tiles)          # N outermost, K (reduction) innermost
        in_specs = [
            pl.BlockSpec((tm, tk), lambda i, kk: (i, kk)),   # x tile
            pl.BlockSpec((tk, r), lambda i, kk: (kk, 0)),    # w6 tile (streamed)
            pl.BlockSpec((1, r), lambda i, kk: (0, 0)),      # b6 (resident)
            pl.BlockSpec((r, r), lambda i, kk: (0, 0)),      # w7 (resident)
            pl.BlockSpec((1, r), lambda i, kk: (0, 0)),      # b7 (resident)
        ]
        out_specs = pl.BlockSpec((tm, r), lambda i, kk: (i, 0))
        scratch_shapes = [pltpu.VMEM((tm, r), jnp.float32)]
        dims = ("parallel", "arbitrary")
        kernel = _head_kernel_streamed
        w6_reads = n_tiles

    n_eff = n_tiles * tm
    cost = pl.CostEstimate(
        flops=2 * n_eff * k_pad * r + 2 * n_eff * r * r,
        transcendentals=0,
        bytes_accessed=(n * k_pad * itemsize
                        + w6_reads * k_pad * r * itemsize
                        + r * r * itemsize + 2 * r * 4
                        + n * r * out_itemsize),
    )

    out = pl.pallas_call(
        kernel,
        out_shape=jax.ShapeDtypeStruct((n, r), out_dtype),
        grid_spec=pltpu.PrefetchScalarGridSpec(
            num_scalar_prefetch=0,
            grid=grid,
            in_specs=in_specs,
            out_specs=out_specs,
            scratch_shapes=scratch_shapes,
        ),
        compiler_params=pltpu.CompilerParams(
            dimension_semantics=dims,
            vmem_limit_bytes=int(vmem_budget),
        ),
        cost_estimate=cost,
    )(x_flat, w6, b6_2d, w7, b7_2d)

    return out


if __name__ == "__main__":
    # Small shapes consistent with the module:
    #   input x: [N=2, C=4, H=16, W=16] -> in_channels = 4*16*16 = 1024
    #   representation_size = 128
    N, C, H, W = 2, 4, 16, 16
    K = C * H * W
    R = 128

    key = jax.random.PRNGKey(0)
    kx, k6w, k6b, k7w, k7b = jax.random.split(key, 5)

    x = jax.random.normal(kx, (N, C, H, W), dtype=jnp.float32)
    # PyTorch Linear weights are [out, in]; we store the transpose [in, out].
    w6 = jax.random.normal(k6w, (K, R), dtype=jnp.float32) * 0.02
    b6 = jax.random.normal(k6b, (R,), dtype=jnp.float32) * 0.01
    w7 = jax.random.normal(k7w, (R, R), dtype=jnp.float32) * 0.02
    b7 = jax.random.normal(k7b, (R,), dtype=jnp.float32) * 0.01

    # Plain-JAX reference (eval-mode dropout = identity).
    x_flat = x.reshape(N, K)
    ref = jnp.maximum(x_flat @ w6 + b6, 0.0)
    ref = jnp.maximum(ref @ w7 + b7, 0.0)

    # 1) f32 streaming, resident-w6 fast path — tight tolerance.
    out_f32 = jax.block_until_ready(
        two_mlp_head(x, w6, b6, w7, b7, compute_dtype=jnp.float32))
    assert out_f32.shape == (N, R)
    assert jnp.allclose(out_f32, ref, atol=1e-4, rtol=1e-4)

    # 2) Default bf16 streaming (f32 accumulation), resident-w6 path.
    out_bf16 = jax.block_until_ready(two_mlp_head(x, w6, b6, w7, b7))
    assert out_bf16.shape == (N, R)
    assert jnp.allclose(out_bf16, ref, atol=1e-1, rtol=1e-1)

    # 3) f32, forced K-streamed accumulation path (grid = (1, 4)) so the
    #    fallback kernel is exercised as well.
    out_str = jax.block_until_ready(
        two_mlp_head(x, w6, b6, w7, b7, compute_dtype=jnp.float32,
                     w6_resident=False, tk_max=256))
    assert out_str.shape == (N, R)
    assert jnp.allclose(out_str, ref, atol=1e-4, rtol=1e-4)

    print("KERNEL_OK")
</pallas_src>

<mosaic_0001>
module attributes {stable_mosaic.version = 11 : i64} {
  func.func @_head_kernel_resident(%arg0: i32, %arg1: memref<8x1024xf32, #tpu.memory_space<vmem>>, %arg2: memref<1024x128xf32, #tpu.memory_space<vmem>>, %arg3: memref<1x128xf32, #tpu.memory_space<vmem>>, %arg4: memref<128x128xf32, #tpu.memory_space<vmem>>, %arg5: memref<1x128xf32, #tpu.memory_space<vmem>>, %arg6: memref<8x128xf32, #tpu.memory_space<vmem>>) attributes {dimension_semantics = [#tpu.dimension_semantics<parallel>], iteration_bounds = array<i64: 1>, scalar_prefetch = 0 : i64, scratch_operands = 0 : i64, tpu.core_type = #tpu.core_type<tc>, window_params = [{transform_indices = @transform_0, window_bounds = array<i64: 8, 1024>}, {pipeline_mode = #tpu.pipeline_mode<synchronous>, transform_indices = @transform_1, window_bounds = array<i64: 1024, 128>}, {pipeline_mode = #tpu.pipeline_mode<synchronous>, transform_indices = @transform_2, window_bounds = array<i64: 1, 128>}, {pipeline_mode = #tpu.pipeline_mode<synchronous>, transform_indices = @transform_3, window_bounds = array<i64: 128, 128>}, {pipeline_mode = #tpu.pipeline_mode<synchronous>, transform_indices = @transform_4, window_bounds = array<i64: 1, 128>}, {transform_indices = @transform_5, window_bounds = array<i64: 8, 128>}]} {
    %c0 = arith.constant 0 : index
    %c0_0 = arith.constant 0 : index
    %0 = vector.load %arg1[%c0, %c0_0] : memref<8x1024xf32, #tpu.memory_space<vmem>>, vector<8x1024xf32>
    %c0_1 = arith.constant 0 : index
    %c0_2 = arith.constant 0 : index
    %1 = vector.load %arg2[%c0_1, %c0_2] : memref<1024x128xf32, #tpu.memory_space<vmem>>, vector<1024x128xf32>
    %cst = arith.constant dense<0.000000e+00> : vector<8x128xf32>
    %2 = tpu.matmul %0, %1, %cst {dimension_numbers = #tpu.dot_dimension_numbers<[1], [0], [0], [1], [0, 0, 1, 1], [], []>} : vector<8x1024xf32>, vector<1024x128xf32>, vector<8x128xf32> -> vector<8x128xf32>
    %c0_3 = arith.constant 0 : index
    %c0_4 = arith.constant 0 : index
    %3 = vector.load %arg3[%c0_3, %c0_4] : memref<1x128xf32, #tpu.memory_space<vmem>>, vector<1x128xf32>
    %4 = vector.broadcast %3 : vector<1x128xf32> to vector<8x128xf32>
    %5 = arith.addf %2, %4 : vector<8x128xf32>
    %cst_5 = arith.constant 0.000000e+00 : f32
    %6 = vector.broadcast %cst_5 : f32 to vector<8x128xf32>
    %7 = arith.maximumf %5, %6 : vector<8x128xf32>
    %c0_6 = arith.constant 0 : index
    %c0_7 = arith.constant 0 : index
    %8 = vector.load %arg4[%c0_6, %c0_7] : memref<128x128xf32, #tpu.memory_space<vmem>>, vector<128x128xf32>
    %cst_8 = arith.constant dense<0.000000e+00> : vector<8x128xf32>
    %9 = tpu.matmul %7, %8, %cst_8 {dimension_numbers = #tpu.dot_dimension_numbers<[1], [0], [0], [1], [0, 0, 1, 1], [], []>} : vector<8x128xf32>, vector<128x128xf32>, vector<8x128xf32> -> vector<8x128xf32>
    %c0_9 = arith.constant 0 : index
    %c0_10 = arith.constant 0 : index
    %10 = vector.load %arg5[%c0_9, %c0_10] : memref<1x128xf32, #tpu.memory_space<vmem>>, vector<1x128xf32>
    %11 = vector.broadcast %10 : vector<1x128xf32> to vector<8x128xf32>
    %12 = arith.addf %9, %11 : vector<8x128xf32>
    %cst_11 = arith.constant 0.000000e+00 : f32
    %13 = vector.broadcast %cst_11 : f32 to vector<8x128xf32>
    %14 = arith.maximumf %12, %13 : vector<8x128xf32>
    %c0_12 = arith.constant 0 : index
    %c0_13 = arith.constant 0 : index
    %15 = vector.load %arg6[%c0_12, %c0_13] : memref<8x128xf32, #tpu.memory_space<vmem>>, vector<8x128xf32>
    tpu.vector_store %arg6[%c0_12, %c0_13], %14 {strides = array<i32>} : memref<8x128xf32, #tpu.memory_space<vmem>>, vector<8x128xf32>,
    return
  }
  func.func @transform_0(%arg0: i32) -> (i32, i32) {
    %c0_i32 = arith.constant 0 : i32
    %c0_i32_0 = arith.constant 0 : i32
    return %arg0, %c0_i32 : i32, i32
  }
  func.func @transform_1(%arg0: i32) -> (i32, i32) {
    %c0_i32 = arith.constant 0 : i32
    %c0_i32_0 = arith.constant 0 : i32
    %c0_i32_1 = arith.constant 0 : i32
    return %c0_i32, %c0_i32_0 : i32, i32
  }
  func.func @transform_2(%arg0: i32) -> (i32, i32) {
    %c0_i32 = arith.constant 0 : i32
    %c0_i32_0 = arith.constant 0 : i32
    %c0_i32_1 = arith.constant 0 : i32
    return %c0_i32, %c0_i32_0 : i32, i32
  }
  func.func @transform_3(%arg0: i32) -> (i32, i32) {
    %c0_i32 = arith.constant 0 : i32
    %c0_i32_0 = arith.constant 0 : i32
    %c0_i32_1 = arith.constant 0 : i32
    return %c0_i32, %c0_i32_0 : i32, i32
  }
  func.func @transform_4(%arg0: i32) -> (i32, i32) {
    %c0_i32 = arith.constant 0 : i32
    %c0_i32_0 = arith.constant 0 : i32
    %c0_i32_1 = arith.constant 0 : i32
    return %c0_i32, %c0_i32_0 : i32, i32
  }
  func.func @transform_5(%arg0: i32) -> (i32, i32) {
    %c0_i32 = arith.constant 0 : i32
    %c0_i32_0 = arith.constant 0 : i32
    return %arg0, %c0_i32 : i32, i32
  }
}

</mosaic_0001>

<bundles_post_ra>
// kernel: tpu_custom_call.1
= control target key start
LH: loop header
LB: loop body
LE: loop exit
PB: predicated region body
PF: predicated region fallthrough
CT: control target
= control target key end

     0   :  { %10 = vsyncpa [#allocation3], 0  ;;  %s1267_s0 = inlined_call_operand.hbm [shape: f32[2,1024], index: 0, kind: input, shape index: {}]   ;;  %s1268_s1 = inlined_call_operand.hbm [shape: f32[1024,128], index: 1, kind: input, shape index: {}]   ;;  %s1269_s2 = inlined_call_operand.vmem [shape: f32[1,128], index: 2, kind: input, shape index: {}]   ;;  %s1270_s3 = inlined_call_operand.hbm [shape: f32[128,128], index: 3, kind: input, shape index: {}]   ;;  %s1271_s4 = inlined_call_operand.vmem [shape: f32[1,128], index: 4, kind: input, shape index: {}]   ;;  %s1272_s5 = inlined_call_operand.hbm [shape: f32[2,128], index: 5, kind: output, shape index: {}]  }
   0x1   :  { %11 = vsyncpa [#allocation6], 0 }
   0x2   :  { %12 = vsyncpa [#allocation4], 0 }
   0x3   :  { %17 = vsyncadd [#allocation3], 768  ;;  %s1153_s18 = smov [#allocation5]   ;;  %s1059_s22 = scalar_lea.hbm %s1268_s1, 16384 }
   0x4   :  { %s30_s19 = sshll.u32 %s1153_s18, 4  ;;  %p1060_p0 = scmp.ne.s32.totalorder %s1268_s1, %s1059_s22  ;;  %s31_s19 = int_to_ptr.vmem [resolvable:$true] %s30_s19 }
   0x5   :  { %p1063_p1 = scmp.lt.u32.totalorder %s1059_s22, %s1268_s1 }
   0x7   :  { %p1065_p2 = pnand %p1063_p1, %p1060_p0 }
   0x9   :  { %1068 = shalt.err (!%p1065_p2)
}
   0xa   :  { %s1069_s27 = scalar_lea.vmem %s31_s19, 16384  ;;  %p1074_p4 = scmp.lt.s32.totalorder %s31_s19, %s31_s19 }
   0xb   :  { %p1070_p3 = scmp.ne.s32.totalorder %s31_s19, %s1069_s27  ;;  %p1075_p5 = scmp.lt.s32.totalorder %s1069_s27, %s1069_s27 }
   0xd   :  { %p1076_p6 = por %p1075_p5, %p1074_p4 }
   0xf   :  { %p1077_p7 = pnand %p1076_p6, %p1070_p3 }
  0x11   :  { %1080 = shalt.err (!%p1077_p7)
}
  0x12   :  { %s1154_s28 = smov 128   ;;  %s1155_s29 = smov 8  }
  0x13   :  { %36 = dma.hbm_to_vmem [thread:$0]  %s1268_s1, 16384, %s31_s19, [#allocation6], %s1154_s28, %s1154_s28, %s1155_s29  }
  0x14   :  { %s1156_s7 = smov [#allocation2]   ;;  %s1081_s11 = scalar_lea.hbm %s1267_s0, 256 }
  0x15   :  { %s18_s8 = sshll.u32 %s1156_s7, 4  ;;  %p1082_p8 = scmp.ne.s32.totalorder %s1267_s0, %s1081_s11  ;;  %s19_s8 = int_to_ptr.vmem [resolvable:$true] %s18_s8 }
  0x16   :  { %p1085_p9 = scmp.lt.u32.totalorder %s1081_s11, %s1267_s0 }
  0x18   :  { %p1087_p10 = pnand %p1085_p9, %p1082_p8 }
  0x1a   :  { %1090 = shalt.err (!%p1087_p10)
}
  0x1b   :  { %s1091_s16 = scalar_lea.vmem %s19_s8, 256  ;;  %s1095_s1 = scalar_lea.vmem %s19_s8, 1024 }
  0x1c   :  { %p1092_p11 = scmp.ne.s32.totalorder %s19_s8, %s1091_s16  ;;  %p1096_p12 = scmp.lt.s32.totalorder %s19_s8, %s19_s8 }
  0x1d   :  { %p1097_p13 = scmp.lt.s32.totalorder %s1095_s1, %s1091_s16 }
  0x1f   :  { %p1098_p0 = por %p1097_p13, %p1096_p12 }
  0x21   :  { %p1099_p1 = pnand %p1098_p0, %p1092_p11 }
  0x23   :  { %1102 = shalt.err (!%p1099_p1)
}
  0x24   :  { %s1157_s17 = smov 256   ;;  %s1158_s18 = smov 16  }
  0x25   :  { %24 = dma.hbm_to_vmem [thread:$0]  %s1267_s0, 256, %s19_s8, [#allocation3], %s1157_s17, %s1157_s17, %s1158_s18  }
  0x26   :  { %s1159_s21 = smov [#allocation7]   ;;  %s1103_s25 = scalar_lea.hbm %s1270_s3, 2048 }
  0x27   :  { %s44_s22 = sshll.u32 %s1159_s21, 4  ;;  %p1104_p2 = scmp.ne.s32.totalorder %s1270_s3, %s1103_s25  ;;  %s45_s22 = int_to_ptr.vmem [resolvable:$true] %s44_s22 }
  0x28   :  { %p1107_p3 = scmp.lt.u32.totalorder %s1103_s25, %s1270_s3 }
  0x2a   :  { %p1109_p4 = pnand %p1107_p3, %p1104_p2 }
  0x2c   :  { %1112 = shalt.err (!%p1109_p4)
}
  0x2d   :  { %s1113_s7 = scalar_lea.vmem %s45_s22, 2048  ;;  %p1118_p6 = scmp.lt.s32.totalorder %s45_s22, %s45_s22 }
  0x2e   :  { %p1114_p5 = scmp.ne.s32.totalorder %s45_s22, %s1113_s7  ;;  %p1119_p7 = scmp.lt.s32.totalorder %s1113_s7, %s1113_s7 }
  0x30   :  { %p1120_p8 = por %p1119_p7, %p1118_p6 }
  0x32   :  { %p1121_p9 = pnand %p1120_p8, %p1114_p5 }
  0x34   :  { %1124 = shalt.err (!%p1121_p9)
}
  0x35   :  { %50 = dma.hbm_to_vmem [thread:$0]  %s1270_s3, 2048, %s45_s22, [#allocation6], %s1154_s28, %s1154_s28, %s1155_s29  }
  0x36   :  { %1147 = dma.done.wait [#allocation3], 1024  }
  0x37   :  { %1148 = vsyncadd [#allocation3], 4294966272 }
  0x38   :  { %1149 = dma.done.wait [#allocation6], 18432  }
  0x39   :  { %1150 = vsyncadd [#allocation6], 4294948864  ;;  %v86_v0 = vld [vmem:[#allocation5 + $0x80] sm:$0xff]  ;;  %v87_v1 = vld [vmem:[#allocation5 + $0x88] sm:$0xff]  ;;  %v1160_v51 = vmov 1983009808   ;;  %v220_v53 = vlaneseq }
  0x3a   :  { %v70_v2 = vld [vmem:[#allocation5] sm:$0xff]  ;;  %v881_v3 = vpack.c.bf16 %v87_v1, %v86_v0  ;;  %v71_v4 = vld [vmem:[#allocation5 + $0x8] sm:$0xff]  ;;  %v88_v11 = vld [vmem:[#allocation5 + $0x90] sm:$0xff]  ;;  %v218_v52 = vunpack.c.l.s4 %v1160_v51  ;;  %vm1162_vm0 = vmmov 0  }
  0x3b   :  { %v118_v5 = vld [vmem:[#allocation5 + $0x180] sm:$0xff]  ;;  %v119_v6 = vld [vmem:[#allocation5 + $0x188] sm:$0xff]  ;;  %v883_v7 = vpack.c.bf16 %v71_v4, %v70_v2  ;;  %v89_v13 = vld [vmem:[#allocation5 + $0x98] sm:$0xff] }
  0x3c   :  { %v913_v8 = vpack.c.bf16 %v119_v6, %v118_v5  ;;  %v102_v9 = vld [vmem:[#allocation5 + $0x100] sm:$0xff]  ;;  %v103_v10 = vld [vmem:[#allocation5 + $0x108] sm:$0xff]  ;;  %882 = vmatprep.subr.bf16.mxu0 %v881_v3  ;;  %v72_v14 = vld [vmem:[#allocation5 + $0x10] sm:$0xff]  ;;  %v885_v16 = vpack.c.bf16 %v89_v13, %v88_v11  ;;  %v219_v2 = vunpack.c.0.s8 %v218_v52  ;;  %v221_v3 = vshrl.u32 %v220_v53, 7 }
  0x3d   :  { %v915_v12 = vpack.c.bf16 %v103_v10, %v102_v9  ;;  %v73_v15 = vld [vmem:[#allocation5 + $0x18] sm:$0xff]  ;;  %884 = vmatpush3.bf16.msra.mxu0 %v883_v7  ;;  %v120_v18 = vld [vmem:[#allocation5 + $0x190] sm:$0xff]  ;;  %v90_v23 = vld [vmem:[#allocation5 + $0xa0] sm:$0xff] }
  0x3e   :  { %914 = vmatprep.subr.bf16.mxu1 %v913_v8  ;;  %v887_v17 = vpack.c.bf16 %v73_v15, %v72_v14  ;;  %v121_v19 = vld [vmem:[#allocation5 + $0x198] sm:$0xff]  ;;  %v104_v20 = vld [vmem:[#allocation5 + $0x110] sm:$0xff]  ;;  %v91_v24 = vld [vmem:[#allocation5 + $0xa8] sm:$0xff]  ;;  %886 = vmatprep.subr.bf16.mxu0 %v885_v16 }
  0x3f   :  { %916 = vmatpush3.bf16.msra.mxu1 %v915_v12  ;;  %v917_v21 = vpack.c.bf16 %v121_v19, %v120_v18  ;;  %v105_v22 = vld [vmem:[#allocation5 + $0x118] sm:$0xff]  ;;  %v889_v26 = vpack.c.bf16 %v91_v24, %v90_v23  ;;  %v74_v27 = vld [vmem:[#allocation5 + $0x20] sm:$0xff]  ;;  %v75_v28 = vld [vmem:[#allocation5 + $0x28] sm:$0xff] }
  0x40   :  { %v919_v25 = vpack.c.bf16 %v105_v22, %v104_v20  ;;  %v122_v29 = vld [vmem:[#allocation5 + $0x1a0] sm:$0xff]  ;;  %v123_v30 = vld [vmem:[#allocation5 + $0x1a8] sm:$0xff]  ;;  %v891_v33 = vpack.c.bf16 %v75_v28, %v74_v27  ;;  %v92_v35 = vld [vmem:[#allocation5 + $0xb0] sm:$0xff] }
  0x41   :  { %918 = vmatprep.subr.bf16.mxu1 %v917_v21  ;;  %v106_v31 = vld [vmem:[#allocation5 + $0x120] sm:$0xff]  ;;  %v107_v32 = vld [vmem:[#allocation5 + $0x128] sm:$0xff]  ;;  %888 = vmatpush3.bf16.msra.mxu0 %v887_v17  ;;  %v921_v34 = vpack.c.bf16 %v123_v30, %v122_v29  ;;  %v93_v36 = vld [vmem:[#allocation5 + $0xb8] sm:$0xff]  ;;  %v1239_v21 = vsub.s32 %v219_v2, %v221_v3 }
  0x42   :  { %v76_v37 = vld [vmem:[#allocation5 + $0x30] sm:$0xff]  ;;  %890 = vmatprep.subr.bf16.mxu0 %v889_v26  ;;  %v923_v38 = vpack.c.bf16 %v107_v32, %v106_v31  ;;  %v893_v39 = vpack.c.bf16 %v93_v36, %v92_v35  ;;  %v77_v40 = vld [vmem:[#allocation5 + $0x38] sm:$0xff]  ;;  %v94_v46 = vld [vmem:[#allocation5 + $0xc0] sm:$0xff] }
  0x43   :  { %920 = vmatpush3.bf16.msra.mxu1 %v919_v25  ;;  %v124_v41 = vld [vmem:[#allocation5 + $0x1b0] sm:$0xff]  ;;  %v125_v42 = vld [vmem:[#allocation5 + $0x1b8] sm:$0xff]  ;;  %v95_v47 = vld [vmem:[#allocation5 + $0xc8] sm:$0xff]  ;;  %v895_v48 = vpack.c.bf16 %v77_v40, %v76_v37 }
  0x44   :  { %922 = vmatprep.subr.bf16.mxu1 %v921_v34  ;;  %v925_v43 = vpack.c.bf16 %v125_v42, %v124_v41  ;;  %v108_v44 = vld [vmem:[#allocation5 + $0x130] sm:$0xff]  ;;  %v109_v45 = vld [vmem:[#allocation5 + $0x138] sm:$0xff]  ;;  %v126_v49 = vld [vmem:[#allocation5 + $0x1c0] sm:$0xff]  ;;  %v897_v55 = vpack.c.bf16 %v95_v47, %v94_v46 }
  0x45   :  { %892 = vmatpush3.bf16.msra.mxu0 %v891_v33  ;;  %v127_v50 = vld [vmem:[#allocation5 + $0x1c8] sm:$0xff]  ;;  %v927_v54 = vpack.c.bf16 %v109_v45, %v108_v44  ;;  %v78_v56 = vld [vmem:[#allocation5 + $0x40] sm:$0xff]  ;;  %v96_v61 = vld [vmem:[#allocation5 + $0xd0] sm:$0xff] }
  0x46   :  { %894 = vmatprep.subr.bf16.mxu0 %v893_v39  ;;  %v79_v57 = vld [vmem:[#allocation5 + $0x48] sm:$0xff]  ;;  %v110_v58 = vld [vmem:[#allocation5 + $0x140] sm:$0xff]  ;;  %v929_v59 = vpack.c.bf16 %v127_v50, %v126_v49  ;;  %v97_v62 = vld [vmem:[#allocation5 + $0xd8] sm:$0xff] }
  0x47   :  { %924 = vmatpush3.bf16.msra.mxu1 %v923_v38  ;;  %v111_v60 = vld [vmem:[#allocation5 + $0x148] sm:$0xff]  ;;  %v128_v63 = vld [vmem:[#allocation5 + $0x1d0] sm:$0xff]  ;;  %v129_v0 = vld [vmem:[#allocation5 + $0x1d8] sm:$0xff]  ;;  %v899_v1 = vpack.c.bf16 %v79_v57, %v78_v56  ;;  %v901_v5 = vpack.c.bf16 %v97_v62, %v96_v61 }
  0x48   :  { %926 = vmatprep.subr.bf16.mxu1 %v925_v43  ;;  %v931_v4 = vpack.c.bf16 %v111_v60, %v110_v58  ;;  %v80_v6 = vld [vmem:[#allocation5 + $0x50] sm:$0xff]  ;;  %v81_v7 = vld [vmem:[#allocation5 + $0x58] sm:$0xff]  ;;  %v933_v9 = vpack.c.bf16 %v129_v0, %v128_v63  ;;  %v98_v11 = vld [vmem:[#allocation5 + $0xe0] sm:$0xff] }
  0x49   :  { %896 = vmatpush3.bf16.msra.mxu0 %v895_v48  ;;  %v112_v8 = vld [vmem:[#allocation5 + $0x150] sm:$0xff]  ;;  %v113_v10 = vld [vmem:[#allocation5 + $0x158] sm:$0xff]  ;;  %v99_v12 = vld [vmem:[#allocation5 + $0xe8] sm:$0xff]  ;;  %v903_v17 = vpack.c.bf16 %v81_v7, %v80_v6 }
  0x4a   :  { %898 = vmatprep.subr.bf16.mxu0 %v897_v55  ;;  %v82_v13 = vld [vmem:[#allocation5 + $0x60] sm:$0xff]  ;;  %v83_v14 = vld [vmem:[#allocation5 + $0x68] sm:$0xff]  ;;  %v100_v20 = vld [vmem:[#allocation5 + $0xf0] sm:$0xff]  ;;  %v935_v22 = vpack.c.bf16 %v113_v10, %v112_v8  ;;  %v905_v23 = vpack.c.bf16 %v99_v12, %v98_v11 }
  0x4b   :  { %928 = vmatpush3.bf16.msra.mxu1 %v927_v54  ;;  %v130_v15 = vld [vmem:[#allocation5 + $0x1e0] sm:$0xff]  ;;  %v131_v16 = vld [vmem:[#allocation5 + $0x1e8] sm:$0xff]  ;;  %v101_v24 = vld [vmem:[#allocation5 + $0xf8] sm:$0xff]  ;;  %v907_v30 = vpack.c.bf16 %v83_v14, %v82_v13 }
  0x4c   :  { %930 = vmatprep.subr.bf16.mxu1 %v929_v59  ;;  %v114_v18 = vld [vmem:[#allocation5 + $0x160] sm:$0xff]  ;;  %v115_v19 = vld [vmem:[#allocation5 + $0x168] sm:$0xff]  ;;  %v937_v25 = vpack.c.bf16 %v131_v16, %v130_v15  ;;  %v132_v27 = vld [vmem:[#allocation5 + $0x1f0] sm:$0xff]  ;;  %v909_v35 = vpack.c.bf16 %v101_v24, %v100_v20 }
  0x4d   :  { %900 = vmatpush3.bf16.msra.mxu0 %v899_v1  ;;  %v1047_v26 = vld [vmem:[#allocation2] ss:$16 sps:$4 sm:$0xff]   ;;  %v133_v28 = vld [vmem:[#allocation5 + $0x1f8] sm:$0xff]  ;;  %v1051_v32 = vld [vmem:[#allocation2 + $0x4] ss:$16 sps:$4 sm:$0xff]   ;;  %v939_v34 = vpack.c.bf16 %v115_v19, %v114_v18 }
  0x4e   :  { %902 = vmatprep.subr.bf16.mxu0 %v901_v5  ;;  %v1049_v29 = vld [vmem:[#allocation2 + $0x20] ss:$16 sps:$4 sm:$0xff]   ;;  %v223_v31 = vrot.slane %v1047_v26, %v1239_v21  ;;  %v1052_v33 = vld [vmem:[#allocation2 + $0x24] ss:$16 sps:$4 sm:$0xff]   ;;  %v85_v37 = vld [vmem:[#allocation5 + $0x78] sm:$0xff]  ;;  %v941_v40 = vpack.c.bf16 %v133_v28, %v132_v27  ;;  %v230_v44 = vrot.slane %v1051_v32, %v1239_v21 }
  0x4f   :  { %932 = vmatpush3.bf16.msra.mxu1 %v931_v4  ;;  %v84_v36 = vld [vmem:[#allocation5 + $0x70] sm:$0xff]  ;;  %v237_v39 = vrot.slane %v1049_v29, %v1239_v21  ;;  %v117_v41 = vld [vmem:[#allocation5 + $0x178] sm:$0xff]  ;;  %v150_v42 = vld [vmem:[#allocation5 + $0x280] sm:$0xff]  ;;  %v244_v45 = vrot.slane %v1052_v33, %v1239_v21 }
  0x50   :  { %934 = vmatprep.subr.bf16.mxu1 %v933_v9  ;;  %v116_v38 = vld [vmem:[#allocation5 + $0x170] sm:$0xff]  ;;  %v151_v43 = vld [vmem:[#allocation5 + $0x288] sm:$0xff]  ;;  %v182_v47 = vld [vmem:[#allocation5 + $0x380] sm:$0xff]  ;;  %v911_v49 = vpack.c.bf16 %v85_v37, %v84_v36 }
  0x51   :  { %904 = vmatpush3.bf16.msra.mxu0 %v903_v17  ;;  %v246_v46 = vcombine.high %v223_v31, %v237_v39  ;;  %v183_v48 = vld [vmem:[#allocation5 + $0x388] sm:$0xff]  ;;  %v248_v50 = vcombine.high %v230_v44, %v244_v45  ;;  %v943_v51 = vpack.c.bf16 %v117_v41, %v116_v38  ;;  %v945_v52 = vpack.c.bf16 %v151_v43, %v150_v42  ;;  %v134_v53 = vld [vmem:[#allocation5 + $0x200] sm:$0xff]  ;;  %v152_v58 = vld [vmem:[#allocation5 + $0x290] sm:$0xff] }
  0x52   :  { %906 = vmatprep.subr.bf16.mxu0 %v905_v23  ;;  %v135_v54 = vld [vmem:[#allocation5 + $0x208] sm:$0xff]  ;;  %v166_v55 = vld [vmem:[#allocation5 + $0x300] sm:$0xff]  ;;  %v977_v56 = vpack.c.bf16 %v183_v48, %v182_v47  ;;  %v153_v59 = vld [vmem:[#allocation5 + $0x298] sm:$0xff]  ;;  %v245_v60 = vcombine.low %v223_v31, %v237_v39  ;;  %v247_v0 = vcombine.low %v230_v44, %v244_v45 }
  0x53   :  { %936 = vmatpush3.bf16.msra.mxu1 %v935_v22  ;;  %357 = vmatprep.mubr.f32.mxu0 %v246_v46  ;;  %v167_v57 = vld [vmem:[#allocation5 + $0x308] sm:$0xff]  ;;  %v184_v61 = vld [vmem:[#allocation5 + $0x390] sm:$0xff]  ;;  %v185_v62 = vld [vmem:[#allocation5 + $0x398] sm:$0xff]  ;;  %v947_v63 = vpack.c.bf16 %v135_v54, %v134_v53  ;;  %v949_v2 = vpack.c.bf16 %v153_v59, %v152_v58 }
  0x54   :  { %938 = vmatprep.subr.bf16.mxu1 %v937_v25  ;;  %427 = vmatprep.mubr.f32.mxu1 %v248_v50  ;;  %v979_v1 = vpack.c.bf16 %v167_v57, %v166_v55  ;;  %v136_v3 = vld [vmem:[#allocation5 + $0x210] sm:$0xff]  ;;  %v137_v4 = vld [vmem:[#allocation5 + $0x218] sm:$0xff]  ;;  %v981_v6 = vpack.c.bf16 %v185_v62, %v184_v61  ;;  %v154_v8 = vld [vmem:[#allocation5 + $0x2a0] sm:$0xff] }
  0x55   :  { %908 = vmatpush3.bf16.msra.mxu0 %v907_v30  ;;  %v168_v5 = vld [vmem:[#allocation5 + $0x310] sm:$0xff]  ;;  %v169_v7 = vld [vmem:[#allocation5 + $0x318] sm:$0xff]  ;;  %v155_v9 = vld [vmem:[#allocation5 + $0x2a8] sm:$0xff]  ;;  %v951_v12 = vpack.c.bf16 %v137_v4, %v136_v3 }
  0x56   :  { %910 = vmatprep.subr.bf16.mxu0 %v909_v35  ;;  %v186_v10 = vld [vmem:[#allocation5 + $0x3a0] sm:$0xff]  ;;  %v187_v11 = vld [vmem:[#allocation5 + $0x3a8] sm:$0xff]  ;;  %v983_v13 = vpack.c.bf16 %v169_v7, %v168_v5  ;;  %v953_v14 = vpack.c.bf16 %v155_v9, %v154_v8  ;;  %v156_v20 = vld [vmem:[#allocation5 + $0x2b0] sm:$0xff] }
  0x57   :  { %940 = vmatpush3.bf16.msra.mxu1 %v939_v34  ;;  %v138_v15 = vld [vmem:[#allocation5 + $0x220] sm:$0xff]  ;;  %v139_v16 = vld [vmem:[#allocation5 + $0x228] sm:$0xff]  ;;  %v985_v18 = vpack.c.bf16 %v187_v11, %v186_v10  ;;  %v157_v22 = vld [vmem:[#allocation5 + $0x2b8] sm:$0xff] }
  0x58   :  { %942 = vmatprep.subr.bf16.mxu1 %v941_v40  ;;  %v170_v17 = vld [vmem:[#allocation5 + $0x320] sm:$0xff]  ;;  %v171_v19 = vld [vmem:[#allocation5 + $0x328] sm:$0xff]  ;;  %v188_v23 = vld [vmem:[#allocation5 + $0x3b0] sm:$0xff]  ;;  %v955_v25 = vpack.c.bf16 %v139_v16, %v138_v15  ;;  %v957_v27 = vpack.c.bf16 %v157_v22, %v156_v20 }
  0x59   :  { %912 = vmatpush3.bf16.msra.mxu0 %v911_v49  ;;  %v189_v24 = vld [vmem:[#allocation5 + $0x3b8] sm:$0xff]  ;;  %v987_v26 = vpack.c.bf16 %v171_v19, %v170_v17  ;;  %v140_v28 = vld [vmem:[#allocation5 + $0x230] sm:$0xff]  ;;  %v158_v33 = vld [vmem:[#allocation5 + $0x2c0] sm:$0xff] }
  0x5a   :  { %946 = vmatprep.subr.bf16.mxu0 %v945_v52  ;;  %v141_v29 = vld [vmem:[#allocation5 + $0x238] sm:$0xff]  ;;  %v172_v30 = vld [vmem:[#allocation5 + $0x330] sm:$0xff]  ;;  %v989_v31 = vpack.c.bf16 %v189_v24, %v188_v23  ;;  %v159_v34 = vld [vmem:[#allocation5 + $0x2c8] sm:$0xff] }
  0x5b   :  { %944 = vmatpush3.bf16.msra.mxu1 %v943_v51  ;;  %v173_v32 = vld [vmem:[#allocation5 + $0x338] sm:$0xff]  ;;  %v142_v35 = vld [vmem:[#allocation5 + $0x240] sm:$0xff]  ;;  %v143_v36 = vld [vmem:[#allocation5 + $0x248] sm:$0xff]  ;;  %v959_v40 = vpack.c.bf16 %v141_v29, %v140_v28  ;;  %v961_v45 = vpack.c.bf16 %v159_v34, %v158_v33  ;;  %v1161_v34 = vmov 0.0|0.0  }
  0x5c   :  { %978 = vmatprep.subr.bf16.mxu1 %v977_v56  ;;  %358 = vmatmul.mubr.f32.vlgmr.msra.gmra.mrb[0].mxu0 %v245_v60  ;;  %v190_v37 = vld [vmem:[#allocation5 + $0x3c0] sm:$0xff]  ;;  %v191_v38 = vld [vmem:[#allocation5 + $0x3c8] sm:$0xff]  ;;  %v160_v42 = vld [vmem:[#allocation5 + $0x2d0] sm:$0xff]  ;;  %v991_v44 = vpack.c.bf16 %v173_v32, %v172_v30  ;;  %v963_v53 = vpack.c.bf16 %v143_v36, %v142_v35 }
  0x5d   :  { %948 = vmatpush3.bf16.msra.mxu0 %v947_v63  ;;  %v174_v39 = vld [vmem:[#allocation5 + $0x340] sm:$0xff]  ;;  %v175_v41 = vld [vmem:[#allocation5 + $0x348] sm:$0xff]  ;;  %v161_v43 = vld [vmem:[#allocation5 + $0x2d8] sm:$0xff]  ;;  %v993_v48 = vpack.c.bf16 %v191_v38, %v190_v37 }
  0x5e   :  { %428 = vmatmul.mubr.f32.vlgmr.msra.gmra.mrb[0].mxu1 %v247_v0  ;;  %950 = vmatprep.subr.bf16.mxu0 %v949_v2  ;;  %v192_v46 = vld [vmem:[#allocation5 + $0x3d0] sm:$0xff]  ;;  %v193_v47 = vld [vmem:[#allocation5 + $0x3d8] sm:$0xff]  ;;  %v995_v54 = vpack.c.bf16 %v175_v41, %v174_v39  ;;  %v965_v55 = vpack.c.bf16 %v161_v43, %v160_v42  ;;  %v163_v2 = vld [vmem:[#allocation5 + $0x2e8] sm:$0xff] }
  0x5f   :  { %980 = vmatpush3.bf16.msra.mxu1 %v979_v1  ;;  %v1053_v49 = vld [vmem:[#allocation2 + $0x8] ss:$16 sps:$4 sm:$0xff]   ;;  %v1057_v51 = vld [vmem:[#allocation2 + $0xc] ss:$16 sps:$4 sm:$0xff]   ;;  %v144_v57 = vld [vmem:[#allocation5 + $0x250] sm:$0xff]  ;;  %v997_v63 = vpack.c.bf16 %v193_v47, %v192_v46 }
  0x60   :  { %982 = vmatprep.subr.bf16.mxu1 %v981_v6  ;;  %v1055_v50 = vld [vmem:[#allocation2 + $0x28] ss:$16 sps:$4 sm:$0xff]   ;;  %v1058_v52 = vld [vmem:[#allocation2 + $0x2c] ss:$16 sps:$4 sm:$0xff]   ;;  %v259_v56 = vrot.slane %v1053_v49, %v1239_v21  ;;  %v176_v59 = vld [vmem:[#allocation5 + $0x350] sm:$0xff]  ;;  %v266_v61 = vrot.slane %v1057_v51, %v1239_v21 }
  0x61   :  { %952 = vmatpush3.bf16.msra.mxu0 %v951_v12  ;;  %v145_v58 = vld [vmem:[#allocation5 + $0x258] sm:$0xff]  ;;  %v273_v60 = vrot.slane %v1055_v50, %v1239_v21  ;;  %v280_v62 = vrot.slane %v1058_v52, %v1239_v21  ;;  %v162_v1 = vld [vmem:[#allocation5 + $0x2e0] sm:$0xff]  ;;  %v195_v4 = vld [vmem:[#allocation5 + $0x3e8] sm:$0xff] }
  0x62   :  { %954 = vmatprep.subr.bf16.mxu0 %v953_v14  ;;  %v177_v0 = vld [vmem:[#allocation5 + $0x358] sm:$0xff]  ;;  %v194_v3 = vld [vmem:[#allocation5 + $0x3e0] sm:$0xff]  ;;  %v967_v7 = vpack.c.bf16 %v145_v58, %v144_v57  ;;  %v969_v9 = vpack.c.bf16 %v163_v2, %v162_v1  ;;  %v147_v11 = vld [vmem:[#allocation5 + $0x268] sm:$0xff] }
  0x63   :  { %984 = vmatpush3.bf16.msra.mxu1 %v983_v13  ;;  %v282_v5 = vcombine.high %v259_v56, %v273_v60  ;;  %v284_v6 = vcombine.high %v266_v61, %v280_v62  ;;  %v999_v8 = vpack.c.bf16 %v177_v0, %v176_v59  ;;  %v146_v10 = vld [vmem:[#allocation5 + $0x260] sm:$0xff]  ;;  %v1001_v21 = vpack.c.bf16 %v195_v4, %v194_v3  ;;  %v179_v13 = vld [vmem:[#allocation5 + $0x368] sm:$0xff]  ;;  %v164_v14 = vld [vmem:[#allocation5 + $0x2f0] sm:$0xff] }
  0x64   :  { %986 = vmatprep.subr.bf16.mxu1 %v985_v18  ;;  %v178_v12 = vld [vmem:[#allocation5 + $0x360] sm:$0xff]  ;;  %v165_v15 = vld [vmem:[#allocation5 + $0x2f8] sm:$0xff]  ;;  %v196_v16 = vld [vmem:[#allocation5 + $0x3f0] sm:$0xff]  ;;  %v971_v18 = vpack.c.bf16 %v147_v11, %v146_v10  ;;  %v281_v29 = vcombine.low %v259_v56, %v273_v60  ;;  %v283_v30 = vcombine.low %v266_v61, %v280_v62  ;;  %v1163_v56 = vmov 0.0  }
  0x65   :  { %956 = vmatpush3.bf16.msra.mxu0 %v955_v25  ;;  %497 = vmatprep.mubr.f32.mxu0 %v282_v5  ;;  %v197_v17 = vld [vmem:[#allocation5 + $0x3f8] sm:$0xff]  ;;  %v1003_v19 = vpack.c.bf16 %v179_v13, %v178_v12  ;;  %v973_v20 = vpack.c.bf16 %v165_v15, %v164_v14  ;;  %v148_v22 = vld [vmem:[#allocation5 + $0x270] sm:$0xff]  ;;  %v575_v32 = vld [vmem:[#allocation7 + $0x8] sm:$0xff] }
  0x66   :  { %958 = vmatprep.subr.bf16.mxu0 %v957_v27  ;;  %567 = vmatprep.mubr.f32.mxu1 %v284_v6  ;;  %v149_v23 = vld [vmem:[#allocation5 + $0x278] sm:$0xff]  ;;  %v1005_v24 = vpack.c.bf16 %v197_v17, %v196_v16  ;;  %v180_v25 = vld [vmem:[#allocation5 + $0x370] sm:$0xff]  ;;  %v578_v38 = vld [vmem:[#allocation7 + $0x20] sm:$0xff] }
  0x67   :  { %988 = vmatpush3.bf16.msra.mxu1 %v987_v26  ;;  %v181_v26 = vld [vmem:[#allocation5 + $0x378] sm:$0xff]  ;;  %v975_v27 = vpack.c.bf16 %v149_v23, %v148_v22  ;;  %v576_v33 = vld [vmem:[#allocation7 + $0x10] sm:$0xff]  ;;  %v579_v39 = vld [vmem:[#allocation7 + $0x28] sm:$0xff] }
  0x68   :  { %990 = vmatprep.subr.bf16.mxu1 %v989_v31  ;;  %v1007_v28 = vpack.c.bf16 %v181_v26, %v180_v25  ;;  %v574_v31 = vld [vmem:[#allocation7] sm:$0xff]  ;;  %v577_v36 = vld [vmem:[#allocation7 + $0x18] sm:$0xff]  ;;  %v580_v41 = vld [vmem:[#allocation7 + $0x30] sm:$0xff] }
  0x69   :  { %960 = vmatpush3.bf16.msra.mxu0 %v959_v40  ;;  %v1010_v35 = vpack.c.bf16 %v575_v32, %v574_v31  ;;  %v1013_v37 = vpack.c.bf16 %v577_v36, %v576_v33  ;;  %v1016_v40 = vpack.c.bf16 %v579_v39, %v578_v38  ;;  %v581_v42 = vld [vmem:[#allocation7 + $0x38] sm:$0xff]  ;;  %v584_v47 = vld [vmem:[#allocation7 + $0x50] sm:$0xff]  ;;  %v586_v50 = vld [vmem:[#allocation7 + $0x60] sm:$0xff] }
  0x6a   :  { %962 = vmatprep.subr.bf16.mxu0 %v961_v45  ;;  %v1019_v43 = vpack.c.bf16 %v581_v42, %v580_v41  ;;  %v583_v45 = vld [vmem:[#allocation7 + $0x48] sm:$0xff]  ;;  %v687_v58 = vld [vmem:[%s1269_s2] ss:$0 sm:$0xff] }
  0x6b   :  { %992 = vmatpush3.bf16.msra.mxu1 %v991_v44  ;;  %v582_v44 = vld [vmem:[#allocation7 + $0x40] sm:$0xff]  ;;  %v587_v51 = vld [vmem:[#allocation7 + $0x68] sm:$0xff] }
  0x6c   :  { %994 = vmatprep.subr.bf16.mxu1 %v993_v48  ;;  %v1022_v46 = vpack.c.bf16 %v583_v45, %v582_v44  ;;  %v585_v48 = vld [vmem:[#allocation7 + $0x58] sm:$0xff]  ;;  %v1028_v52 = vpack.c.bf16 %v587_v51, %v586_v50  ;;  %v688_v11 = vld [vmem:[%s1271_s4] ss:$0 sm:$0xff] }
  0x6d   :  { %964 = vmatpush3.bf16.msra.mxu0 %v963_v53  ;;  %v1025_v49 = vpack.c.bf16 %v585_v48, %v584_v47  ;;  %v588_v53 = vld [vmem:[#allocation7 + $0x70] sm:$0xff] }
  0x6e   :  { %966 = vmatprep.subr.bf16.mxu0 %v965_v55 }
  0x6f   :  { %996 = vmatpush3.bf16.msra.mxu1 %v995_v54  ;;  %v589_v54 = vld [vmem:[#allocation7 + $0x78] sm:$0xff] }
  0x70   :  { %998 = vmatprep.subr.bf16.mxu1 %v997_v63  ;;  %v1031_v55 = vpack.c.bf16 %v589_v54, %v588_v53 }
  0x71   :  { %968 = vmatpush3.bf16.msra.mxu0 %v967_v7 }
  0x72   :  { %970 = vmatprep.subr.bf16.mxu0 %v969_v9 }
  0x73   :  { %1000 = vmatpush3.bf16.msra.mxu1 %v999_v8 }
  0x74   :  { %1002 = vmatprep.subr.bf16.mxu1 %v1001_v21 }
  0x75   :  { %972 = vmatpush3.bf16.msra.mxu0 %v971_v18 }
  0x76   :  { %974 = vmatprep.subr.bf16.mxu0 %v973_v20 }
  0x77   :  { %1004 = vmatpush3.bf16.msra.mxu1 %v1003_v19 }
  0x78   :  { %1006 = vmatprep.subr.bf16.mxu1 %v1005_v24 }
  0x79   :  { %976 = vmatpush3.bf16.msra.mxu0 %v975_v27 }
  0x7a   :  { %1009 = vmatprep.subr.bf16.mxu0 %v1161_v34 }
  0x7b   :  { %1008 = vmatpush3.bf16.msra.mxu1 %v1007_v28 }
  0x7c   :  { %498 = vmatmul.mubr.f32.vlgmr.msra.gmra.mrb[2].mxu0 %v281_v29 }
  0x7d   :  { %1011 = vmatpush3.bf16.msra.mxu0 %v1010_v35  ;;  %878 = vmatprep.mubr.msk.f32.mxu0 %vm1162_vm0, %v1163_v56 }
  0x7e   :  { %568 = vmatmul.mubr.f32.vlgmr.msra.gmra.mrb[2].mxu1 %v283_v30  ;;  %1012 = vmatprep.subr.bf16.mxu0 %v1161_v34 }
  0x81   :  { %1014 = vmatpush3.bf16.msra.mxu0 %v1013_v37 }
  0x82   :  { %1015 = vmatprep.subr.bf16.mxu0 %v1161_v34 }
  0x85   :  { %1017 = vmatpush3.bf16.msra.mxu0 %v1016_v40 }
  0x86   :  { %1018 = vmatprep.subr.bf16.mxu0 %v1161_v34 }
  0x89   :  { %1020 = vmatpush3.bf16.msra.mxu0 %v1019_v43 }
  0x8a   :  { %1021 = vmatprep.subr.bf16.mxu0 %v1161_v34 }
  0x8d   :  { %1023 = vmatpush3.bf16.msra.mxu0 %v1022_v46 }
  0x8e   :  { %1024 = vmatprep.subr.bf16.mxu0 %v1161_v34 }
  0x91   :  { %1026 = vmatpush3.bf16.msra.mxu0 %v1025_v49 }
  0x92   :  { %1027 = vmatprep.subr.bf16.mxu0 %v1161_v34 }
  0x95   :  { %1029 = vmatpush3.bf16.msra.mxu0 %v1028_v52 }
  0x96   :  { %1030 = vmatprep.subr.bf16.mxu0 %v1161_v34 }
  0x99   :  { %1032 = vmatpush3.bf16.msra.mxu0 %v1031_v55 }
 0x12f   :  { %v721_v57 = vpop.f32.mrb[0].mxu0 }
 0x130   :  { %v722_v59 = vpop.f32.mrb[1].mxu0 }
 0x131   :  { %v756_v60 = vpop.f32.mrb[0].mxu1  ;;  %v723_v61 = vadd.f32 %v722_v59, %v721_v57 }
 0x132   :  { %v757_v62 = vpop.f32.mrb[1].mxu1 }
 0x133   :  { %v758_v63 = vadd.f32 %v757_v62, %v756_v60  ;;  %v360_v0 = vadd.f32 %v723_v61, %v687_v58 }
 0x135   :  { %v430_v1 = vadd.f32 %v758_v63, %v360_v0 }
 0x14f   :  { %v791_v2 = vpop.f32.mrb[2].mxu0 }
 0x150   :  { %v792_v3 = vpop.f32.mrb[3].mxu0 }
 0x151   :  { %v826_v4 = vpop.f32.mrb[2].mxu1  ;;  %v793_v5 = vadd.f32 %v792_v3, %v791_v2 }
 0x152   :  { %v827_v6 = vpop.f32.mrb[3].mxu1 }
 0x153   :  { %v828_v7 = vadd.f32 %v827_v6, %v826_v4  ;;  %v500_v8 = vadd.f32 %v793_v5, %v430_v1 }
 0x155   :  { %v570_v9 = vadd.f32 %v828_v7, %v500_v8 }
 0x157   :  { %v573_v10 = vmax.f32 %v570_v9, 0.0 }
 0x159   :  { %879 = vmatmul.mubr.f32.vlgmr.msra.gmra.mrb[4].mxu0 %v573_v10 }
 0x22c   :  { %v663_v12 = vpop.f32.mrb[4].mxu0 }
 0x22d   :  { %v664_v21 = vadd.f32 %v688_v11, %v663_v12  ;;  %v880_v13 = vpop.f32.mrb[5].mxu0 }
 0x22f   :  { %v667_v14 = vmax.f32 %v664_v21, 0.0 }
 0x231   :  { %668 = vst [vmem:[#allocation8] sm:$0xff] %v667_v14 }
 0x232   :  { %673 = vsyncadd [#allocation4], 96  ;;  %s1164_s2 = smov [#allocation8]  }
 0x233   :  { %s674_s10 = sshll.u32 %s1164_s2, 4  ;;  %s675_s10 = int_to_ptr.vmem [resolvable:$true] %s674_s10 }
 0x234   :  { %s1125_s11 = scalar_lea.vmem %s675_s10, 32  ;;  %s1129_s12 = scalar_lea.vmem %s675_s10, 128 }
 0x235   :  { %p1126_p10 = scmp.ne.s32.totalorder %s675_s10, %s1125_s11  ;;  %p1130_p11 = scmp.lt.s32.totalorder %s675_s10, %s675_s10 }
 0x236   :  { %p1131_p12 = scmp.lt.s32.totalorder %s1129_s12, %s1125_s11 }
 0x238   :  { %p1132_p13 = por %p1131_p12, %p1130_p11 }
 0x23a   :  { %p1133_p0 = pnand %p1132_p13, %p1126_p10 }
 0x23c   :  { %1136 = shalt.err (!%p1133_p0)
}
 0x23d   :  { %s1137_s4 = scalar_lea.hbm %s1272_s5, 32 }
 0x23e   :  { %p1138_p1 = scmp.ne.s32.totalorder %s1272_s5, %s1137_s4  ;;  %p1141_p2 = scmp.lt.u32.totalorder %s1137_s4, %s1272_s5 }
 0x240   :  { %p1143_p3 = pnand %p1141_p2, %p1138_p1 }
 0x242   :  { %1146 = shalt.err (!%p1143_p3)
}
 0x243   :  { %s1165_s18 = smov 32   ;;  %s1166_s19 = smov 2  }
 0x244   :  { %680 = dma.vmem_to_hbm [thread:$0]  %s675_s10, 32, %s1272_s5, [#allocation4], %s1165_s18, %s1165_s18, %s1166_s19  }
 0x245   :  { %1151 = dma.done.wait [#allocation4], 128  }
 0x246   :  { %1152 = vsyncadd [#allocation4], 4294967168 }
 0x247   :  { %684 = vsyncpa [#allocation3], 1 }
 0x248   :  { %685 = vsyncpa [#allocation6], 1 }
 0x249   :  { %686 = vsyncpa [#allocation4], 1 }

</bundles_post_ra>
